<compile_context>
chip_gen: v5e
topology: v5e:2x2
jax: 0.10.0
libtpu: 0.0.40
codegen_flags: <defaults>
</compile_context>

<pallas_src>
import functools

import jax
import jax.numpy as jnp
from jax.experimental import pallas as pl
from jax.experimental.pallas import tpu as pltpu

C_IN = 2
H1 = 32
H2 = 64


def _init_project_kernel(x_ref, w1_ref, b1_ref, w2_ref, b2_ref, w3_ref, b3_ref,
                         o_ref):
  """Fused 3-layer pointwise MLP on one (channels, tn) tile, channels-first."""
  x = x_ref[0]                       # (2, tn) f32
  w1 = w1_ref[...]                   # (32, 2)

  # Layer 1: K=2 contraction as two VPU FMAs (avoid a wasted MXU pass) + ReLU.
  h1 = w1[:, 0:1] * x[0:1, :] + w1[:, 1:2] * x[1:2, :] + b1_ref[...]
  h1 = jnp.maximum(h1, 0.0)          # (32, tn)

  # Layer 2: conv1x1 (BN folded) + ReLU — MXU matmul (64,32)@(32,tn).
  h2 = jnp.dot(w2_ref[...], h1, preferred_element_type=jnp.float32) + b2_ref[...]
  h2 = jnp.maximum(h2, 0.0)          # (64, tn)

  # Layer 3: conv1x1 — MXU matmul (c_out,64)@(64,tn).
  out = jnp.dot(w3_ref[...], h2, preferred_element_type=jnp.float32) + b3_ref[...]
  o_ref[0] = out.astype(o_ref.dtype)


def _choose_tile(N, tn_max):
  """Pick a lane-dense tile along N; avoid padding whenever possible."""
  if N <= tn_max:
    return N, N                       # single full-extent block (always legal)
  t = (tn_max // 128) * 128
  while t >= 128:
    if N % t == 0:
      return t, N                     # exact divisor, no padding
    t -= 128
  tn = (tn_max // 128) * 128          # rare fallback: pad N up to tile multiple
  return tn, pl.cdiv(N, tn) * tn


def init_project_pallas(x_ncl, params, *, tn_max=2048):
  """Run InitProject on x_ncl of shape (B, 2, N). Returns (B, channels, N)."""
  w1, b1, w2, b2, w3, b3 = params
  c_out = w3.shape[0]
  B, cin, N = x_ncl.shape
  assert cin == C_IN

  tn, N_pad = _choose_tile(N, tn_max)
  x_in = x_ncl
  if N_pad != N:
    x_in = jnp.pad(x_ncl, ((0, 0), (0, 0), (0, N_pad - N)))

  grid = (B, N_pad // tn)
  const = lambda shape: pl.BlockSpec(shape, lambda b, j: (0, 0))

  out = pl.pallas_call(
      _init_project_kernel,
      out_shape=jax.ShapeDtypeStruct((B, c_out, N_pad), jnp.float32),
      grid_spec=pltpu.PrefetchScalarGridSpec(
          num_scalar_prefetch=0,
          grid=grid,
          in_specs=[
              pl.BlockSpec((1, C_IN, tn), lambda b, j: (b, 0, j)),  # x tile
              const((H1, C_IN)), const((H1, 1)),      # layer 1 (BN folded)
              const((H2, H1)), const((H2, 1)),        # layer 2 (BN folded)
              const((c_out, H2)), const((c_out, 1)),  # layer 3
          ],
          out_specs=pl.BlockSpec((1, c_out, tn), lambda b, j: (b, 0, j)),
      ),
      compiler_params=pltpu.CompilerParams(
          dimension_semantics=("parallel", "parallel")),
  )(x_in, w1, b1, w2, b2, w3, b3)

  if N_pad != N:
    out = out[:, :, :N]
  return out


def make_params(channels, key):
  """Deterministically build Conv1d / BatchNorm1d params and fold BN (eval
  mode) into the preceding conv. Weights are (cout, cin) for W @ x
  (channels-first), biases are (cout, 1) columns."""
  ks = jax.random.split(key, 12)
  eps = 1e-5

  def conv(kw, kb, cin, cout):
    # torch Conv1d weight is (cout, cin, 1); we keep (cout, cin).
    w = jax.random.normal(kw, (cout, cin), jnp.float32) * 0.1
    b = jax.random.normal(kb, (cout,), jnp.float32) * 0.1
    return w, b

  def bn(kg, kb, km, kv, c):
    gamma = 1.0 + 0.1 * jax.random.normal(kg, (c,), jnp.float32)
    beta = 0.1 * jax.random.normal(kb, (c,), jnp.float32)
    mean = 0.1 * jax.random.normal(km, (c,), jnp.float32)
    var = jnp.abs(jax.random.normal(kv, (c,), jnp.float32)) + 0.5
    return gamma, beta, mean, var

  def fold(w, b, gamma, beta, mean, var):
    scale = gamma / jnp.sqrt(var + eps)          # (cout,)
    w_f = w * scale[:, None]
    b_f = (b - mean) * scale + beta
    return w_f, b_f

  w1, b1 = conv(ks[0], ks[1], C_IN, H1)
  g1, be1, m1, v1 = bn(ks[2], ks[3], ks[4], ks[5], H1)
  w1f, b1f = fold(w1, b1, g1, be1, m1, v1)

  w2, b2 = conv(ks[6], ks[7], H1, H2)
  g2, be2, m2, v2 = bn(ks[8], ks[9], ks[10], ks[11], H2)
  w2f, b2f = fold(w2, b2, g2, be2, m2, v2)

  kw3, kb3 = jax.random.split(jax.random.fold_in(key, 99))
  w3, b3 = conv(kw3, kb3, H2, channels)

  return (w1f, b1f[:, None], w2f, b2f[:, None], w3, b3[:, None])


def init_project_ref(x_ncl, params):
  """Pure-JAX reference (same folded params), channels-first."""
  w1, b1, w2, b2, w3, b3 = params
  h1 = jnp.maximum(jnp.einsum('oc,bcn->bon', w1, x_ncl) + b1[None], 0.0)
  h2 = jnp.maximum(jnp.einsum('oc,bcn->bon', w2, h1) + b2[None], 0.0)
  return jnp.einsum('oc,bcn->bon', w3, h2) + b3[None]


if __name__ == "__main__":
  channels = 64            # output channels of the module
  B, N = 2, 512            # small, lane-dense example shapes

  key = jax.random.PRNGKey(0)
  kx, kp = jax.random.split(key)
  x = jax.random.normal(kx, (B, C_IN, N), jnp.float32)      # NCL like torch
  params = make_params(channels, kp)

  fn = jax.jit(functools.partial(init_project_pallas, tn_max=2048))
  out = jax.block_until_ready(fn(x, params))

  ref = init_project_ref(x, params)
  assert out.shape == (B, channels, N), out.shape
  assert jnp.allclose(out, ref, atol=1e-4, rtol=1e-4), "mismatch vs reference"

  print("KERNEL_OK")
</pallas_src>

<mosaic_0001>
module attributes {stable_mosaic.version = 11 : i64} {
  func.func @_init_project_kernel(%arg0: i32, %arg1: i32, %arg2: memref<1x2x512xf32, #tpu.memory_space<vmem>>, %arg3: memref<32x2xf32, #tpu.memory_space<vmem>>, %arg4: memref<32x1xf32, #tpu.memory_space<vmem>>, %arg5: memref<64x32xf32, #tpu.memory_space<vmem>>, %arg6: memref<64x1xf32, #tpu.memory_space<vmem>>, %arg7: memref<64x64xf32, #tpu.memory_space<vmem>>, %arg8: memref<64x1xf32, #tpu.memory_space<vmem>>, %arg9: memref<1x64x512xf32, #tpu.memory_space<vmem>>) attributes {dimension_semantics = [#tpu.dimension_semantics<parallel>, #tpu.dimension_semantics<parallel>], iteration_bounds = array<i64: 2, 1>, scalar_prefetch = 0 : i64, scratch_operands = 0 : i64, tpu.core_type = #tpu.core_type<tc>, window_params = [{transform_indices = @transform_0, window_bounds = array<i64: 1, 2, 512>}, {pipeline_mode = #tpu.pipeline_mode<synchronous>, transform_indices = @transform_1, window_bounds = array<i64: 32, 2>}, {pipeline_mode = #tpu.pipeline_mode<synchronous>, transform_indices = @transform_2, window_bounds = array<i64: 32, 1>}, {pipeline_mode = #tpu.pipeline_mode<synchronous>, transform_indices = @transform_3, window_bounds = array<i64: 64, 32>}, {pipeline_mode = #tpu.pipeline_mode<synchronous>, transform_indices = @transform_4, window_bounds = array<i64: 64, 1>}, {pipeline_mode = #tpu.pipeline_mode<synchronous>, transform_indices = @transform_5, window_bounds = array<i64: 64, 64>}, {pipeline_mode = #tpu.pipeline_mode<synchronous>, transform_indices = @transform_6, window_bounds = array<i64: 64, 1>}, {transform_indices = @transform_7, window_bounds = array<i64: 1, 64, 512>}]} {
    %c0 = arith.constant 0 : index
    %c0_0 = arith.constant 0 : index
    %c0_1 = arith.constant 0 : index
    %0 = vector.load %arg2[%c0, %c0_0, %c0_1] : memref<1x2x512xf32, #tpu.memory_space<vmem>>, vector<1x2x512xf32>
    %1 = vector.shape_cast %0 : vector<1x2x512xf32> to vector<2x512xf32>
    %c0_2 = arith.constant 0 : index
    %c0_3 = arith.constant 0 : index
    %2 = vector.load %arg3[%c0_2, %c0_3] : memref<32x2xf32, #tpu.memory_space<vmem>>, vector<32x2xf32>
    %3 = vector.extract_strided_slice %2 {offsets = [0, 0], sizes = [32, 1], strides = [1, 1]} : vector<32x2xf32> to vector<32x1xf32>
    %4 = vector.extract_strided_slice %1 {offsets = [0, 0], sizes = [1, 512], strides = [1, 1]} : vector<2x512xf32> to vector<1x512xf32>
    %5 = vector.broadcast %3 : vector<32x1xf32> to vector<32x512xf32>
    %6 = vector.broadcast %4 : vector<1x512xf32> to vector<32x512xf32>
    %7 = arith.mulf %5, %6 : vector<32x512xf32>
    %8 = vector.extract_strided_slice %2 {offsets = [0, 1], sizes = [32, 1], strides = [1, 1]} : vector<32x2xf32> to vector<32x1xf32>
    %9 = vector.extract_strided_slice %1 {offsets = [1, 0], sizes = [1, 512], strides = [1, 1]} : vector<2x512xf32> to vector<1x512xf32>
    %10 = vector.broadcast %8 : vector<32x1xf32> to vector<32x512xf32>
    %11 = vector.broadcast %9 : vector<1x512xf32> to vector<32x512xf32>
    %12 = arith.mulf %10, %11 : vector<32x512xf32>
    %13 = arith.addf %7, %12 : vector<32x512xf32>
    %c0_4 = arith.constant 0 : index
    %c0_5 = arith.constant 0 : index
    %14 = vector.load %arg4[%c0_4, %c0_5] : memref<32x1xf32, #tpu.memory_space<vmem>>, vector<32x1xf32>
    %15 = vector.broadcast %14 : vector<32x1xf32> to vector<32x512xf32>
    %16 = arith.addf %13, %15 : vector<32x512xf32>
    %cst = arith.constant 0.000000e+00 : f32
    %17 = vector.broadcast %cst : f32 to vector<32x512xf32>
    %18 = arith.maximumf %16, %17 : vector<32x512xf32>
    %c0_6 = arith.constant 0 : index
    %c0_7 = arith.constant 0 : index
    %19 = vector.load %arg5[%c0_6, %c0_7] : memref<64x32xf32, #tpu.memory_space<vmem>>, vector<64x32xf32>
    %cst_8 = arith.constant dense<0.000000e+00> : vector<64x512xf32>
    %20 = tpu.matmul %19, %18, %cst_8 {dimension_numbers = #tpu.dot_dimension_numbers<[1], [0], [0], [1], [0, 0, 1, 1], [], []>} : vector<64x32xf32>, vector<32x512xf32>, vector<64x512xf32> -> vector<64x512xf32>
    %c0_9 = arith.constant 0 : index
    %c0_10 = arith.constant 0 : index
    %21 = vector.load %arg6[%c0_9, %c0_10] : memref<64x1xf32, #tpu.memory_space<vmem>>, vector<64x1xf32>
    %22 = vector.broadcast %21 : vector<64x1xf32> to vector<64x512xf32>
    %23 = arith.addf %20, %22 : vector<64x512xf32>
    %cst_11 = arith.constant 0.000000e+00 : f32
    %24 = vector.broadcast %cst_11 : f32 to vector<64x512xf32>
    %25 = arith.maximumf %23, %24 : vector<64x512xf32>
    %c0_12 = arith.constant 0 : index
    %c0_13 = arith.constant 0 : index
    %26 = vector.load %arg7[%c0_12, %c0_13] : memref<64x64xf32, #tpu.memory_space<vmem>>, vector<64x64xf32>
    %cst_14 = arith.constant dense<0.000000e+00> : vector<64x512xf32>
    %27 = tpu.matmul %26, %25, %cst_14 {dimension_numbers = #tpu.dot_dimension_numbers<[1], [0], [0], [1], [0, 0, 1, 1], [], []>} : vector<64x64xf32>, vector<64x512xf32>, vector<64x512xf32> -> vector<64x512xf32>
    %c0_15 = arith.constant 0 : index
    %c0_16 = arith.constant 0 : index
    %28 = vector.load %arg8[%c0_15, %c0_16] : memref<64x1xf32, #tpu.memory_space<vmem>>, vector<64x1xf32>
    %29 = vector.broadcast %28 : vector<64x1xf32> to vector<64x512xf32>
    %30 = arith.addf %27, %29 : vector<64x512xf32>
    %c0_17 = arith.constant 0 : index
    %c0_18 = arith.constant 0 : index
    %c0_19 = arith.constant 0 : index
    %31 = vector.load %arg9[%c0_17, %c0_18, %c0_19] : memref<1x64x512xf32, #tpu.memory_space<vmem>>, vector<1x64x512xf32>
    %32 = vector.shape_cast %31 : vector<1x64x512xf32> to vector<64x512xf32>
    %33 = vector.shape_cast %30 : vector<64x512xf32> to vector<1x64x512xf32>
    tpu.vector_store %arg9[%c0_17, %c0_18, %c0_19], %33 {strides = array<i32>} : memref<1x64x512xf32, #tpu.memory_space<vmem>>, vector<1x64x512xf32>,
    return
  }
  func.func @transform_0(%arg0: i32, %arg1: i32) -> (i32, i32, i32) {
    %c0_i32 = arith.constant 0 : i32
    %c0_i32_0 = arith.constant 0 : i32
    return %arg0, %c0_i32, %arg1 : i32, i32, i32
  }
  func.func @transform_1(%arg0: i32, %arg1: i32) -> (i32, i32) {
    %c0_i32 = arith.constant 0 : i32
    %c0_i32_0 = arith.constant 0 : i32
    %c0_i32_1 = arith.constant 0 : i32
    return %c0_i32, %c0_i32_0 : i32, i32
  }
  func.func @transform_2(%arg0: i32, %arg1: i32) -> (i32, i32) {
    %c0_i32 = arith.constant 0 : i32
    %c0_i32_0 = arith.constant 0 : i32
    %c0_i32_1 = arith.constant 0 : i32
    return %c0_i32, %c0_i32_0 : i32, i32
  }
  func.func @transform_3(%arg0: i32, %arg1: i32) -> (i32, i32) {
    %c0_i32 = arith.constant 0 : i32
    %c0_i32_0 = arith.constant 0 : i32
    %c0_i32_1 = arith.constant 0 : i32
    return %c0_i32, %c0_i32_0 : i32, i32
  }
  func.func @transform_4(%arg0: i32, %arg1: i32) -> (i32, i32) {
    %c0_i32 = arith.constant 0 : i32
    %c0_i32_0 = arith.constant 0 : i32
    %c0_i32_1 = arith.constant 0 : i32
    return %c0_i32, %c0_i32_0 : i32, i32
  }
  func.func @transform_5(%arg0: i32, %arg1: i32) -> (i32, i32) {
    %c0_i32 = arith.constant 0 : i32
    %c0_i32_0 = arith.constant 0 : i32
    %c0_i32_1 = arith.constant 0 : i32
    return %c0_i32, %c0_i32_0 : i32, i32
  }
  func.func @transform_6(%arg0: i32, %arg1: i32) -> (i32, i32) {
    %c0_i32 = arith.constant 0 : i32
    %c0_i32_0 = arith.constant 0 : i32
    %c0_i32_1 = arith.constant 0 : i32
    return %c0_i32, %c0_i32_0 : i32, i32
  }
  func.func @transform_7(%arg0: i32, %arg1: i32) -> (i32, i32, i32) {
    %c0_i32 = arith.constant 0 : i32
    %c0_i32_0 = arith.constant 0 : i32
    return %arg0, %c0_i32, %arg1 : i32, i32, i32
  }
}

</mosaic_0001>

<bundles_post_ra>
// kernel: init_project_pallas.1
= control target key start
LH: loop header
LB: loop body
LE: loop exit
PB: predicated region body
PF: predicated region fallthrough
CT: control target
= control target key end

     0   :  { %12 = vsyncpa [#allocation3], 0  ;;  %s1762_s0 = inlined_call_operand.vmem [shape: f32[2,2,512], index: 0, kind: input, shape index: {}]   ;;  %s1763_s1 = inlined_call_operand.vmem [shape: f32[32,2], index: 1, kind: input, shape index: {}]   ;;  %s1764_s2 = inlined_call_operand.vmem [shape: f32[32,1], index: 2, kind: input, shape index: {}]   ;;  %s1765_s3 = inlined_call_operand.vmem [shape: f32[64,32], index: 3, kind: input, shape index: {}]   ;;  %s1766_s4 = inlined_call_operand.vmem [shape: f32[64,1], index: 4, kind: input, shape index: {}]   ;;  %s1767_s5 = inlined_call_operand.vmem [shape: f32[64,64], index: 5, kind: input, shape index: {}]   ;;  %s1768_s6 = inlined_call_operand.vmem [shape: f32[64,1], index: 6, kind: input, shape index: {}]   ;;  %s1769_s7 = inlined_call_operand.hbm [shape: f32[2,64,512], index: 7, kind: output, shape index: {}]  }
   0x1   :  { %14 = vsyncpa [#allocation3 + $0x1], 0  ;;  %s1400_s24 = smov 0   ;;  %s1402_s25 = smov 0  }
   0x2   :  { %s1404_s26 = smov 0   ;;  %s1406_s27 = smov 0  }
   0x3   :  { %s1408_s28 = smov 0   ;;  %s1410_s29 = smov 0  }
   0x4 LB: > { %s1129_s30 = sadd.s32 4294967295, %s1354_s29   ;;  %s1130_s8 = sadd.s32 4294967294, %s1354_s29   ;;  %s1354_s29 = sphi %s1410_s29, %s20_s29   ;;  %s1350_s28 = sphi %s1408_s28, %s1776_s28   ;;  %s1346_s27 = sphi %s1406_s27, %s1775_s27   ;;  %s1342_s26 = sphi %s1404_s26, %s1774_s26   ;;  %s1338_s25 = sphi %s1402_s25, %s1773_s25   ;;  %s1334_s24 = sphi %s1400_s24, %s1772_s24  }
   0x5   : > { %s32_s9 = sadd.s32 1, %s1350_s28  ;;  %s195_s10 = sadd.s32 1, %s1342_s26 }
   0x6   : > { %p34_p0 = scmp.ge.s32.totalorder %s32_s9, 2  ;;  %p205_p1 = scmp.ne.s32.totalorder %s1342_s26, %s1338_s25 }
   0x7   : > { %p206_p2 = scmp.eq.s32.totalorder %s1129_s30, 1  ;;  %p211_p3 = scmp.ne.s32.totalorder %s1338_s25, %s1334_s24 }
   0x8   : > { %s1778_s9 = smov (%p34_p0, %s32_s9), 0  ;;  %p212_p5 = scmp.eq.s32.totalorder %s1130_s8, 1 }
   0x9   : > { %p1440_p4 = por %p206_p2, %p205_p1  ;;  %s190_s12 = ssub.s32 %s1350_s28, %s1778_s9 }
   0xa   : > { %p1133_p6 = scmp.ge.s32.totalorder %s1354_s29, 1  ;;  %p193_p7 = scmp.eq.s32.totalorder %s190_s12, 0 }
   0xb   : > { %p1447_p8 = por %p212_p5, %p211_p3  ;;  %p261_p9 = scmp.lt.s32.totalorder %s1354_s29, 3 }
   0xc   : > { %s1453_s14 = scalar_select %p193_p7, %s1342_s26, %s195_s10  }
   0xd   : > { %p262_p10 = pnand %p1133_p6, %p261_p9 }
   0xe   : > { %p298_p11 = scmp.lt.s32.totalorder (!%p262_p10), %s1346_s27, 1  ;;  %s294_s22 = sand.u32 (!%p262_p10), 1, %s1338_s25  }
   0xf   : > { %265 = sbr.rel (%p262_p10) target bundleno = 577 (0x241), region = 48  ;;  %s1134_s23 = sshll.u32 (!%p262_p10), %s294_s22, 8 }
  0x14   : > { %v312_v0 = vld [vmem:[%s1763_s1 + $0x18] sm:$0xff]  ;;  %v311_v1 = vld [vmem:[%s1763_s1 + $0x10] sm:$0xff]  ;;  %v310_v2 = vld [vmem:[%s1763_s1 + $0x8] sm:$0xff]  ;;  %v1356_v3 = vmov 0   ;;  %v1357_v4 = vmov 1   ;;  %s299_s30 = scalar_select %p298_p11, %s1346_s27, 1 }
  0x15   : > { %1271 = vset.pattern.permute.xlu2 %v1356_v3  ;;  %1269 = vset.pattern.permute.xlu1 %v1356_v3  ;;  %v309_v5 = vld [vmem:[%s1763_s1] sm:$0xff]  ;;  %v425_v6 = vld [vmem:[%s1764_s2 + $0x18] sm:$0xff]  ;;  %v424_v7 = vld [vmem:[%s1764_s2 + $0x10] sm:$0xff]  ;;  %vm534_vm0 = vcmask 261120   ;;  %vm811_vm1 = vcmask 523264  }
  0x16   : > { %1267 = vset.pattern.permute.xlu0 %v1356_v3  ;;  %325 = vperm.xlu1 %1269, %v311_v1   ;;  %v422_v8 = vld [vmem:[%s1764_s2] sm:$0xff]  ;;  %v423_v9 = vld [vmem:[%s1764_s2 + $0x8] sm:$0xff]  ;;  %v493_v10 = vld [vmem:[%s1766_s4 + $0x38] sm:$0xff]  ;;  %s1206_s8 = sshll.u32 %s299_s30, 3  ;;  %s1689_s30 = scalar_lea.vmem [#allocation2], %s1134_s23 }
  0x17   : > { %330 = vperm.xlu0 %1267, %v312_v0   ;;  %320 = vperm.xlu2 %1271, %v310_v2   ;;  %v489_v11 = vld [vmem:[%s1766_s4 + $0x18] sm:$0xff]  ;;  %v492_v12 = vld [vmem:[%s1766_s4 + $0x30] sm:$0xff]  ;;  %v491_v13 = vld [vmem:[%s1766_s4 + $0x28] sm:$0xff]  ;;  %s305_s15 = scalar_lea.vmem %s1762_s0, %s1206_s8  ;;  %s1207_s8 = sshll.u32 %s1346_s27, 8 }
  0x18   : > { %v486_v14 = vld [vmem:[%s1766_s4] sm:$0xff]  ;;  %v488_v16 = vld [vmem:[%s1766_s4 + $0x10] sm:$0xff]  ;;  %v487_v18 = vld [vmem:[%s1766_s4 + $0x8] sm:$0xff]  ;;  %s1047_s16 = sshll.u32 %s1689_s30, 4  ;;  %s1033_s27 = scalar_lea.sflag [#allocation3], %s294_s22  ;;  %s1048_s16 = int_to_ptr.vmem [resolvable:$true] %s1047_s16 }
  0x19   : > { %v490_v15 = vld [vmem:[%s1766_s4 + $0x20] sm:$0xff]  ;;  %v765_v17 = vld [vmem:[%s1768_s6 + $0x10] sm:$0xff]  ;;  %v768_v20 = vld [vmem:[%s1768_s6 + $0x28] sm:$0xff]  ;;  %s1296_s23 = scalar_lea.hbm %s1769_s7, 512 }
  0x1a   : > { %v763_v19 = vld [vmem:[%s1768_s6] sm:$0xff]  ;;  %v764_v21 = vld [vmem:[%s1768_s6 + $0x8] sm:$0xff]  ;;  %v766_v22 = vld [vmem:[%s1768_s6 + $0x18] sm:$0xff] }
  0x1b   : > { %v767_v23 = vld [vmem:[%s1768_s6 + $0x20] sm:$0xff]  ;;  %v769_v24 = vld [vmem:[%s1768_s6 + $0x30] sm:$0xff]  ;;  %v770_v25 = vld [vmem:[%s1768_s6 + $0x38] sm:$0xff] }
  0x1c   : > { %v308_v29 = vld [vmem:[%s305_s15] sm:$0xff]  ;;  %s1046_s15 = scalar_lea.hbm %s1769_s7, %s1207_s8 }
  0x1d   : > { %v378_v31 = vperm.slane %v308_v29, 1  ;;  %v379_v32 = vperm.slane %v308_v29, 3  ;;  %v380_v33 = vperm.slane %v308_v29, 5  ;;  %v381_v34 = vperm.slane %v308_v29, 7  ;;  %s1049_s17 = sshll.u32 %s1046_s15, 4  ;;  %s1050_s17 = int_to_ptr.hbm [resolvable:$true] %s1049_s17 }
  0x1e   : > { %1270 = vset.pattern.permute.xlu1 %v1357_v4  ;;  %v334_v35 = vperm.slane %v308_v29, 0  ;;  %v335_v36 = vperm.slane %v308_v29, 2  ;;  %v336_v37 = vperm.slane %v308_v29, 4  ;;  %v337_v38 = vperm.slane %v308_v29, 6  ;;  %s1290_s18 = sshra.s32 %s1050_s17, 4  ;;  %s1291_s18 = int_to_ptr.hbm [resolvable:$true] %s1290_s18 }
  0x1f   : > { %1268 = vset.pattern.permute.xlu0 %v1357_v4  ;;  %1272 = vset.pattern.permute.xlu2 %v1357_v4  ;;  %v386_v39 = vperm.slane %v378_v31, 1  ;;  %v387_v40 = vperm.slane %v379_v32, 1  ;;  %v388_v41 = vperm.slane %v380_v33, 1  ;;  %v389_v42 = vperm.slane %v381_v34, 1  ;;  %s1292_s19 = scalar_lea.hbm %s1291_s18, 256  ;;  %p1297_p1 = scmp.lt.s32.totalorder %s1291_s18, %s1769_s7 }
  0x20   : > { %375 = vperm.xlu0 %1268, %v312_v0   ;;  %371 = vperm.xlu1 %1270, %v311_v1   ;;  %v342_v43 = vperm.slane %v334_v35, 0  ;;  %v343_v44 = vperm.slane %v335_v36, 0  ;;  %v344_v45 = vperm.slane %v336_v37, 0  ;;  %v345_v46 = vperm.slane %v337_v38, 0  ;;  %p1293_p12 = scmp.ne.s32.totalorder %s1291_s18, %s1292_s19  ;;  %p1298_p2 = scmp.lt.s32.totalorder %s1296_s23, %s1292_s19 }
  0x21   : > { %367 = vperm.xlu2 %1272, %v310_v2  }
  0x22   : > { %p1294_p13 = pnand %p1293_p12, %p1440_p4  ;;  %p1299_p3 = por %p1298_p2, %p1297_p1 }
  0x24   : > { %p1295_p0 = pneg %p1294_p13 }
  0x26   : > { %p1300_p5 = pnand %p1299_p3, %p1295_p0 }
  0x28   : > { %1273 = vset.pattern.permute.xlu1 %v1356_v3  ;;  %363 = vperm.xlu0 %1268, %v309_v5  }
  0x29   : > { %1274 = vset.pattern.permute.xlu2 %v1356_v3  ;;  %443 = vperm.xlu1 %1273, %v425_v6  }
  0x2a   : > { %315 = vperm.xlu2 %1274, %v309_v5  }
  0x30   : > { %1275 = vset.pattern.permute.xlu0 %v1356_v3 }
  0x31   : > { %438 = vperm.xlu1 %1273, %v424_v7   ;;  %428 = vperm.xlu0 %1275, %v422_v8  }
  0x32   : > { %433 = vperm.xlu2 %1274, %v423_v9  }
  0x39   : > { %531 = vperm.xlu1 %1273, %v493_v10   ;;  %511 = vperm.xlu0 %1275, %v489_v11  }
  0x3a   : > { %526 = vperm.xlu2 %1274, %v492_v12  }
  0x41   : > { %521 = vperm.xlu1 %1273, %v491_v13   ;;  %496 = vperm.xlu0 %1275, %v486_v14  }
  0x42   : > { %516 = vperm.xlu2 %1274, %v490_v15  }
  0x49   : > { %506 = vperm.xlu1 %1273, %v488_v16   ;;  %783 = vperm.xlu0 %1275, %v765_v17  }
  0x4a   : > { %501 = vperm.xlu2 %1274, %v487_v18  }
  0x51   : > { %773 = vperm.xlu1 %1273, %v763_v19   ;;  %798 = vperm.xlu0 %1275, %v768_v20  }
  0x52   : > { %778 = vperm.xlu2 %1274, %v764_v21  }
  0x59   : > { %788 = vperm.xlu1 %1273, %v766_v22  }
  0x5a   : > { %793 = vperm.xlu2 %1274, %v767_v23  }
  0x61   : > { %803 = vperm.xlu1 %1273, %v769_v24  }
  0x62   : > { %808 = vperm.xlu2 %1274, %v770_v25  }
  0x71   : > { %v321_v26 = vpop.permute.xlu2 %320 }
  0x72   : > { %v350_v49 = vmul.f32 %v342_v43, %v321_v26  ;;  %v351_v50 = vmul.f32 %v343_v44, %v321_v26  ;;  %v352_v51 = vmul.f32 %v344_v45, %v321_v26  ;;  %v353_v52 = vmul.f32 %v345_v46, %v321_v26 }
  0x7b   : > { %v368_v30 = vpop.permute.xlu2 %367 }
  0x7c   : > { %v394_v53 = vmul.f32 %v386_v39, %v368_v30  ;;  %v395_v54 = vmul.f32 %v387_v40, %v368_v30  ;;  %v396_v55 = vmul.f32 %v388_v41, %v368_v30  ;;  %v397_v56 = vmul.f32 %v389_v42, %v368_v30 }
  0x7e   : > { %v410_v2 = vadd.f32 %v394_v53, %v350_v49  ;;  %v411_v3 = vadd.f32 %v395_v54, %v351_v50  ;;  %v412_v4 = vadd.f32 %v396_v55, %v352_v51  ;;  %v413_v5 = vadd.f32 %v397_v56, %v353_v52 }
  0x84   : > { %v316_v57 = vpop.permute.xlu2 %315 }
  0x85   : > { %v346_v11 = vmul.f32 %v342_v43, %v316_v57  ;;  %v347_v12 = vmul.f32 %v343_v44, %v316_v57  ;;  %v348_v13 = vmul.f32 %v344_v45, %v316_v57  ;;  %v349_v14 = vmul.f32 %v345_v46, %v316_v57 }
  0x88   : > { %v1532_v27 = vpop.permute.xlu1 %325 }
  0x89   : > { %v331_v28 = vpop.permute.xlu0 %330  ;;  %v354_v29 = vmul.f32 %v342_v43, %v1532_v27  ;;  %v355_v30 = vmul.f32 %v343_v44, %v1532_v27  ;;  %v356_v34 = vmul.f32 %v344_v45, %v1532_v27  ;;  %v357_v35 = vmul.f32 %v345_v46, %v1532_v27 }
  0x8a   : > { %v358_v62 = vmul.f32 %v342_v43, %v331_v28  ;;  %v359_v63 = vmul.f32 %v343_v44, %v331_v28  ;;  %v360_v0 = vmul.f32 %v344_v45, %v331_v28  ;;  %v361_v1 = vmul.f32 %v345_v46, %v331_v28 }
  0x8c   : > { %v434_v31 = vpop.permute.xlu2 %433 }
  0x8d   : > { %v450_v36 = vadd.f32 %v434_v31, %v410_v2 }
  0x92   : > { %v376_v47 = vpop.permute.xlu0 %375  ;;  %v372_v48 = vpop.permute.xlu1 %371 }
  0x93   : > { %v402_v58 = vmul.f32 %v386_v39, %v376_v47  ;;  %v403_v59 = vmul.f32 %v387_v40, %v376_v47  ;;  %v404_v60 = vmul.f32 %v388_v41, %v376_v47  ;;  %v405_v61 = vmul.f32 %v389_v42, %v376_v47 }
  0x94   : > { %v398_v20 = vmul.f32 %v386_v39, %v372_v48  ;;  %v399_v21 = vmul.f32 %v387_v40, %v372_v48  ;;  %v400_v22 = vmul.f32 %v388_v41, %v372_v48  ;;  %v401_v23 = vmul.f32 %v389_v42, %v372_v48 }
  0x95   : > { %v418_v7 = vadd.f32 %v402_v58, %v358_v62  ;;  %v419_v8 = vadd.f32 %v403_v59, %v359_v63  ;;  %v420_v9 = vadd.f32 %v404_v60, %v360_v0  ;;  %v421_v10 = vadd.f32 %v405_v61, %v361_v1 }
  0x96   : > { %v451_v47 = vadd.f32 %v434_v31, %v411_v3  ;;  %v414_v48 = vadd.f32 %v398_v20, %v354_v29  ;;  %v415_v49 = vadd.f32 %v399_v21, %v355_v30  ;;  %v416_v43 = vadd.f32 %v400_v22, %v356_v34 }
  0x97   : > { %v417_v50 = vadd.f32 %v401_v23, %v357_v35  ;;  %v466_v63 = vmax.f32 %v450_v36, 0.0 }
  0x98   : > { %v467_v0 = vmax.f32 %v451_v47, 0.0 }
  0x9a   : > { %v364_v6 = vpop.permute.xlu0 %363 }
  0x9b   : > { %v444_v15 = vpop.permute.xlu1 %443  ;;  %v390_v32 = vmul.f32 %v386_v39, %v364_v6  ;;  %v391_v33 = vmul.f32 %v387_v40, %v364_v6  ;;  %v392_v37 = vmul.f32 %v388_v41, %v364_v6  ;;  %v393_v38 = vmul.f32 %v389_v42, %v364_v6 }
  0x9c   : > { %v458_v16 = vadd.f32 %v444_v15, %v418_v7  ;;  %v459_v17 = vadd.f32 %v444_v15, %v419_v8  ;;  %v460_v18 = vadd.f32 %v444_v15, %v420_v9  ;;  %v461_v19 = vadd.f32 %v444_v15, %v421_v10  ;;  %v478_v7 = vld [vmem:[%s1765_s3] sm:$0xff]  ;;  %v479_v8 = vld [vmem:[%s1765_s3 + $0x8] sm:$0xff]  ;;  %v480_v9 = vld [vmem:[%s1765_s3 + $0x10] sm:$0xff] }
  0x9d   : > { %v452_v39 = vadd.f32 %v434_v31, %v412_v4  ;;  %v453_v40 = vadd.f32 %v434_v31, %v413_v5  ;;  %v406_v52 = vadd.f32 %v390_v32, %v346_v11  ;;  %v407_v45 = vadd.f32 %v391_v33, %v347_v12  ;;  %v481_v10 = vld [vmem:[%s1765_s3 + $0x18] sm:$0xff]  ;;  %v482_v11 = vld [vmem:[%s1765_s3 + $0x20] sm:$0xff]  ;;  %v483_v12 = vld [vmem:[%s1765_s3 + $0x28] sm:$0xff] }
  0x9e   : > { %v474_v24 = vmax.f32 %v458_v16, 0.0  ;;  %v475_v25 = vmax.f32 %v459_v17, 0.0  ;;  %v476_v26 = vmax.f32 %v460_v18, 0.0  ;;  %v477_v28 = vmax.f32 %v461_v19, 0.0 }
  0x9f   : > { %v408_v42 = vadd.f32 %v392_v37, %v348_v13  ;;  %v409_v56 = vadd.f32 %v393_v38, %v349_v14  ;;  %v468_v1 = vmax.f32 %v452_v39, 0.0  ;;  %v469_v2 = vmax.f32 %v453_v40, 0.0  ;;  %v484_v13 = vld [vmem:[%s1765_s3 + $0x30] sm:$0xff]  ;;  %v485_v14 = vld [vmem:[%s1765_s3 + $0x38] sm:$0xff]  ;;  %v527_v38 = vpop.permute.xlu2 %526 }
  0xa0   : > { %571 = vmatpush.msra.mxu0 %v474_v24  ;;  %612 = vmatpush.msra.mxu1 %v475_v25 }
  0xa1   : > { %653 = vmatpush.msra.mxu2 %v476_v26  ;;  %694 = vmatpush.msra.mxu3 %v477_v28 }
  0xa3   : > { %v439_v44 = vpop.permute.xlu1 %438  ;;  %v429_v51 = vpop.permute.xlu0 %428 }
  0xa4   : > { %v454_v53 = vadd.f32 %v439_v44, %v414_v48  ;;  %v455_v27 = vadd.f32 %v439_v44, %v415_v49  ;;  %v456_v46 = vadd.f32 %v439_v44, %v416_v43  ;;  %v457_v54 = vadd.f32 %v439_v44, %v417_v50 }
  0xa5   : > { %v446_v55 = vadd.f32 %v429_v51, %v406_v52  ;;  %v447_v41 = vadd.f32 %v429_v51, %v407_v45  ;;  %v448_v61 = vadd.f32 %v429_v51, %v408_v42  ;;  %v449_v62 = vadd.f32 %v429_v51, %v409_v56 }
  0xa6   : > { %v470_v57 = vmax.f32 %v454_v53, 0.0  ;;  %v471_v58 = vmax.f32 %v455_v27, 0.0  ;;  %v472_v59 = vmax.f32 %v456_v46, 0.0  ;;  %v473_v60 = vmax.f32 %v457_v54, 0.0 }
  0xa7   : > { %v462_v3 = vmax.f32 %v446_v55, 0.0  ;;  %v463_v4 = vmax.f32 %v447_v41, 0.0  ;;  %v464_v5 = vmax.f32 %v448_v61, 0.0  ;;  %v465_v6 = vmax.f32 %v449_v62, 0.0  ;;  %v517_v44 = vpop.permute.xlu2 %516 }
  0xa8   : > { %572 = vmatpush.msra.mxu0 %v470_v57  ;;  %613 = vmatpush.msra.mxu1 %v471_v58 }
  0xa9   : > { %654 = vmatpush.msra.mxu2 %v472_v59  ;;  %695 = vmatpush.msra.mxu3 %v473_v60 }
  0xaa   : > { %573 = vmatpush.msra.mxu0 %v466_v63  ;;  %614 = vmatpush.msra.mxu1 %v467_v0 }
  0xab   : > { %655 = vmatpush.msra.mxu2 %v468_v1  ;;  %696 = vmatpush.msra.mxu3 %v469_v2  ;;  %v532_v47 = vpop.permute.xlu1 %531  ;;  %v512_v55 = vpop.permute.xlu0 %511 }
  0xac   : > { %574 = vmatpush.msra.mxu0 %v462_v3  ;;  %615 = vmatpush.msra.mxu1 %v463_v4 }
  0xad   : > { %656 = vmatpush.msra.mxu2 %v464_v5  ;;  %697 = vmatpush.msra.mxu3 %v465_v6 }
  0xae   : > { %1137 = vmatmul.msk.f32.vlgmr.msra.gmra.mxu0 %vm534_vm0, %v478_v7  ;;  %1145 = vmatmul.msk.f32.vlgmr.msra.gmra.mxu1 %vm534_vm0, %v478_v7 }
  0xaf   : > { %1153 = vmatmul.msk.f32.vlgmr.msra.gmra.mxu2 %vm534_vm0, %v478_v7  ;;  %1161 = vmatmul.msk.f32.vlgmr.msra.gmra.mxu3 %vm534_vm0, %v478_v7 }
  0xb3   : > { %v522_v51 = vpop.permute.xlu1 %521 }
  0xb6   : > { %1138 = vmatmul.msk.f32.gmra.mxu0 %vm534_vm0, %v479_v8  ;;  %1146 = vmatmul.msk.f32.gmra.mxu1 %vm534_vm0, %v479_v8 }
  0xb7   : > { %1154 = vmatmul.msk.f32.gmra.mxu2 %vm534_vm0, %v479_v8  ;;  %1162 = vmatmul.msk.f32.gmra.mxu3 %vm534_vm0, %v479_v8 }
  0xbb   : > { %v507_v4 = vpop.permute.xlu1 %506 }
  0xbe   : > { %1139 = vmatmul.msk.f32.gmra.mxu0 %vm534_vm0, %v480_v9  ;;  %1147 = vmatmul.msk.f32.gmra.mxu1 %vm534_vm0, %v480_v9 }
  0xbf   : > { %1155 = vmatmul.msk.f32.gmra.mxu2 %vm534_vm0, %v480_v9  ;;  %1163 = vmatmul.msk.f32.gmra.mxu3 %vm534_vm0, %v480_v9 }
  0xc6   : > { %1140 = vmatmul.msk.f32.gmra.mxu0 %vm534_vm0, %v481_v10  ;;  %1148 = vmatmul.msk.f32.gmra.mxu1 %vm534_vm0, %v481_v10 }
  0xc7   : > { %1156 = vmatmul.msk.f32.gmra.mxu2 %vm534_vm0, %v481_v10  ;;  %1164 = vmatmul.msk.f32.gmra.mxu3 %vm534_vm0, %v481_v10 }
  0xce   : > { %1141 = vmatmul.msk.f32.gmra.mxu0 %vm534_vm0, %v482_v11  ;;  %1149 = vmatmul.msk.f32.gmra.mxu1 %vm534_vm0, %v482_v11 }
  0xcf   : > { %1157 = vmatmul.msk.f32.gmra.mxu2 %vm534_vm0, %v482_v11  ;;  %1165 = vmatmul.msk.f32.gmra.mxu3 %vm534_vm0, %v482_v11 }
  0xd6   : > { %1142 = vmatmul.msk.f32.gmra.mxu0 %vm534_vm0, %v483_v12  ;;  %1150 = vmatmul.msk.f32.gmra.mxu1 %vm534_vm0, %v483_v12 }
  0xd7   : > { %1158 = vmatmul.msk.f32.gmra.mxu2 %vm534_vm0, %v483_v12  ;;  %1166 = vmatmul.msk.f32.gmra.mxu3 %vm534_vm0, %v483_v12 }
  0xde   : > { %1143 = vmatmul.msk.f32.gmra.mxu0 %vm534_vm0, %v484_v13  ;;  %1151 = vmatmul.msk.f32.gmra.mxu1 %vm534_vm0, %v484_v13 }
  0xdf   : > { %1159 = vmatmul.msk.f32.gmra.mxu2 %vm534_vm0, %v484_v13  ;;  %1167 = vmatmul.msk.f32.gmra.mxu3 %vm534_vm0, %v484_v13  ;;  %v502_v13 = vpop.permute.xlu2 %501 }
  0xe6   : > { %1144 = vmatmul.msk.f32.gmra.mxu0 %vm534_vm0, %v485_v14  ;;  %1152 = vmatmul.msk.f32.gmra.mxu1 %vm534_vm0, %v485_v14 }
  0xe7   : > { %1160 = vmatmul.msk.f32.gmra.mxu2 %vm534_vm0, %v485_v14  ;;  %1168 = vmatmul.msk.f32.gmra.mxu3 %vm534_vm0, %v485_v14 }
 0x12b   : > { %v1594_v15 = vpop.f32.mrf.mxu0  ;;  %v1596_v16 = vpop.f32.mrf.mxu1 }
 0x132   : > { %v1598_v17 = vpop.f32.mrf.mxu2  ;;  %v1600_v18 = vpop.f32.mrf.mxu3 }
 0x133   : > { %v1602_v19 = vpop.f32.mrf.mxu0  ;;  %v1604_v20 = vpop.f32.mrf.mxu1 }
 0x13a   : > { %v1606_v21 = vpop.f32.mrf.mxu2  ;;  %v1608_v22 = vpop.f32.mrf.mxu3 }
 0x13b   : > { %v582_v23 = vpop.f32.mrf.mxu0  ;;  %v623_v24 = vpop.f32.mrf.mxu1 }
 0x13c   : > { %v583_v9 = vadd.f32 %v582_v23, %v507_v4  ;;  %v624_v10 = vadd.f32 %v623_v24, %v507_v4 }
 0x142   : > { %v1610_v25 = vpop.f32.mrf.mxu2  ;;  %v1612_v26 = vpop.f32.mrf.mxu3 }
 0x143   : > { %v585_v28 = vpop.f32.mrf.mxu0  ;;  %v626_v29 = vpop.f32.mrf.mxu1 }
 0x144   : > { %v586_v62 = vadd.f32 %v585_v28, %v512_v55  ;;  %v627_v63 = vadd.f32 %v626_v29, %v512_v55 }
 0x14a   : > { %v1614_v30 = vpop.f32.mrf.mxu2  ;;  %v1616_v31 = vpop.f32.mrf.mxu3 }
 0x14b   : > { %v588_v32 = vpop.f32.mrf.mxu0  ;;  %v629_v33 = vpop.f32.mrf.mxu1 }
 0x14c   : > { %v589_v58 = vadd.f32 %v588_v32, %v517_v44  ;;  %v630_v59 = vadd.f32 %v629_v33, %v517_v44  ;;  %v580_v33 = vadd.f32 %v1602_v19, %v502_v13  ;;  %v668_v19 = vadd.f32 %v1614_v30, %v512_v55 }
 0x14e   : > { %v739_v11 = vmax.f32 %v589_v58, 0.0  ;;  %v740_v12 = vmax.f32 %v630_v59, 0.0  ;;  %v758_v58 = vld [vmem:[%s1767_s5 + $0x18] sm:$0xff]  ;;  %v759_v59 = vld [vmem:[%s1767_s5 + $0x20] sm:$0xff] }
 0x152   : > { %v670_v34 = vpop.f32.mrf.mxu2  ;;  %v711_v35 = vpop.f32.mrf.mxu3 }
 0x153   : > { %v591_v36 = vpop.f32.mrf.mxu0  ;;  %v632_v37 = vpop.f32.mrf.mxu1  ;;  %v671_v23 = vadd.f32 %v670_v34, %v517_v44  ;;  %v712_v24 = vadd.f32 %v711_v35, %v517_v44  ;;  %v727_v34 = vmax.f32 %v580_v33, 0.0 }
 0x154   : > { %v592_v41 = vadd.f32 %v591_v36, %v522_v51  ;;  %v633_v42 = vadd.f32 %v632_v37, %v522_v51  ;;  %v621_v36 = vadd.f32 %v1604_v20, %v502_v13  ;;  %v735_v37 = vmax.f32 %v586_v62, 0.0  ;;  %v762_v62 = vld [vmem:[%s1767_s5 + $0x38] sm:$0xff] }
 0x155   : > { %v709_v20 = vadd.f32 %v1616_v31, %v512_v55  ;;  %v741_v44 = vmax.f32 %v671_v23, 0.0  ;;  %v662_v31 = vadd.f32 %v1606_v21, %v502_v13 }
 0x156   : > { %v743_v0 = vmax.f32 %v592_v41, 0.0  ;;  %v744_v1 = vmax.f32 %v633_v42, 0.0  ;;  %v728_v35 = vmax.f32 %v621_v36, 0.0 }
 0x15a   : > { %v673_v48 = vpop.f32.mrf.mxu2  ;;  %v714_v49 = vpop.f32.mrf.mxu3 }
 0x15b   : > { %v594_v43 = vpop.f32.mrf.mxu0  ;;  %v635_v50 = vpop.f32.mrf.mxu1  ;;  %v674_v14 = vadd.f32 %v673_v48, %v522_v51  ;;  %v715_v28 = vadd.f32 %v714_v49, %v522_v51  ;;  %v731_v51 = vmax.f32 %v583_v9, 0.0 }
 0x15c   : > { %v595_v53 = vadd.f32 %v594_v43, %v527_v38  ;;  %v636_v27 = vadd.f32 %v635_v50, %v527_v38  ;;  %v736_v43 = vmax.f32 %v627_v63, 0.0  ;;  %v774_v63 = vpop.permute.xlu1 %773 }
 0x15e   : > { %v747_v60 = vmax.f32 %v595_v53, 0.0  ;;  %v748_v61 = vmax.f32 %v636_v27, 0.0  ;;  %v703_v27 = vadd.f32 %v1608_v22, %v502_v13  ;;  %v729_v22 = vmax.f32 %v662_v31, 0.0 }
 0x160   : > { %v730_v42 = vmax.f32 %v703_v27, 0.0 }
 0x162   : > { %v676_v39 = vpop.f32.mrf.mxu2  ;;  %v717_v40 = vpop.f32.mrf.mxu3 }
 0x163   : > { %v597_v52 = vpop.f32.mrf.mxu0  ;;  %v638_v45 = vpop.f32.mrf.mxu1  ;;  %v677_v5 = vadd.f32 %v676_v39, %v527_v38  ;;  %v718_v6 = vadd.f32 %v717_v40, %v527_v38  ;;  %v732_v39 = vmax.f32 %v624_v10, 0.0  ;;  %v745_v40 = vmax.f32 %v674_v14, 0.0 }
 0x164   : > { %v598_v46 = vadd.f32 %v597_v52, %v532_v47  ;;  %v639_v54 = vadd.f32 %v638_v45, %v532_v47  ;;  %v497_v38 = vpop.permute.xlu0 %496  ;;  %v746_v52 = vmax.f32 %v715_v28, 0.0  ;;  %v742_v45 = vmax.f32 %v712_v24, 0.0 }
 0x165   : > { %v750_v50 = vmax.f32 %v718_v6, 0.0  ;;  %v577_v48 = vadd.f32 %v1594_v15, %v497_v38  ;;  %v618_v49 = vadd.f32 %v1596_v16, %v497_v38  ;;  %v665_v15 = vadd.f32 %v1610_v25, %v507_v4  ;;  %v755_v25 = vld [vmem:[%s1767_s5] sm:$0xff] }
 0x166   : > { %v751_v56 = vmax.f32 %v598_v46, 0.0  ;;  %v752_v57 = vmax.f32 %v639_v54, 0.0  ;;  %v706_v16 = vadd.f32 %v1612_v26, %v507_v4  ;;  %v737_v46 = vmax.f32 %v668_v19, 0.0  ;;  %v779_v4 = vpop.permute.xlu2 %778 }
 0x167   : > { %v723_v53 = vmax.f32 %v577_v48, 0.0  ;;  %v724_v30 = vmax.f32 %v618_v49, 0.0  ;;  %v738_v54 = vmax.f32 %v709_v20, 0.0  ;;  %v659_v26 = vadd.f32 %v1598_v17, %v497_v38  ;;  %v756_v17 = vld [vmem:[%s1767_s5 + $0x8] sm:$0xff] }
 0x168   : > { %844 = vmatpush.msrb.mxu0 %v751_v56  ;;  %885 = vmatpush.msrb.mxu1 %v752_v57  ;;  %v700_v55 = vadd.f32 %v1600_v18, %v497_v38  ;;  %v733_v21 = vmax.f32 %v665_v15, 0.0  ;;  %v734_v41 = vmax.f32 %v706_v16, 0.0  ;;  %v757_v18 = vld [vmem:[%s1767_s5 + $0x10] sm:$0xff]  ;;  %v789_v38 = vpop.permute.xlu1 %788 }
 0x169   : > { %v725_v56 = vmax.f32 %v659_v26, 0.0 }
 0x16a   : > { %v679_v2 = vpop.f32.mrf.mxu2  ;;  %v720_v3 = vpop.f32.mrf.mxu3  ;;  %845 = vmatpush.msrb.mxu0 %v747_v60  ;;  %886 = vmatpush.msrb.mxu1 %v748_v61  ;;  %v726_v57 = vmax.f32 %v700_v55, 0.0  ;;  %v760_v60 = vld [vmem:[%s1767_s5 + $0x28] sm:$0xff]  ;;  %v761_v61 = vld [vmem:[%s1767_s5 + $0x30] sm:$0xff] }
 0x16b   : > { %v680_v7 = vadd.f32 %v679_v2, %v532_v47  ;;  %v721_v8 = vadd.f32 %v720_v3, %v532_v47  ;;  %v749_v47 = vmax.f32 %v677_v5, 0.0 }
 0x16c   : > { %846 = vmatpush.msrb.mxu0 %v743_v0  ;;  %887 = vmatpush.msrb.mxu1 %v744_v1  ;;  %v784_v13 = vpop.permute.xlu0 %783 }
 0x16d   : > { %v753_v29 = vmax.f32 %v680_v7, 0.0  ;;  %v754_v32 = vmax.f32 %v721_v8, 0.0 }
 0x16e   : > { %847 = vmatpush.msrb.mxu0 %v739_v11  ;;  %888 = vmatpush.msrb.mxu1 %v740_v12  ;;  %v794_v19 = vpop.permute.xlu2 %793 }
 0x16f   : > { %926 = vmatpush.msrb.mxu2 %v753_v29  ;;  %967 = vmatpush.msrb.mxu3 %v754_v32 }
 0x170   : > { %848 = vmatpush.msrb.mxu0 %v735_v37  ;;  %889 = vmatpush.msrb.mxu1 %v736_v43  ;;  %v804_v55 = vpop.permute.xlu1 %803 }
 0x171   : > { %927 = vmatpush.msrb.mxu2 %v749_v47  ;;  %968 = vmatpush.msrb.mxu3 %v750_v50 }
 0x172   : > { %849 = vmatpush.msrb.mxu0 %v731_v51  ;;  %890 = vmatpush.msrb.mxu1 %v732_v39 }
 0x173   : > { %928 = vmatpush.msrb.mxu2 %v745_v40  ;;  %969 = vmatpush.msrb.mxu3 %v746_v52 }
 0x174   : > { %850 = vmatpush.msrb.mxu0 %v727_v34  ;;  %891 = vmatpush.msrb.mxu1 %v728_v35 }
 0x175   : > { %929 = vmatpush.msrb.mxu2 %v741_v44  ;;  %970 = vmatpush.msrb.mxu3 %v742_v45  ;;  %v799_v45 = vpop.permute.xlu0 %798 }
 0x176   : > { %851 = vmatpush.msrb.mxu0 %v723_v53  ;;  %892 = vmatpush.msrb.mxu1 %v724_v30 }
 0x177   : > { %930 = vmatpush.msrb.mxu2 %v737_v46  ;;  %971 = vmatpush.msrb.mxu3 %v738_v54 }
 0x178   : > { %1169 = vmatmul.msk.f32.vlgmr.msrb.gmra.mxu0 %vm811_vm1, %v755_v25  ;;  %1177 = vmatmul.msk.f32.vlgmr.msrb.gmra.mxu1 %vm811_vm1, %v755_v25 }
 0x179   : > { %931 = vmatpush.msrb.mxu2 %v733_v21  ;;  %972 = vmatpush.msrb.mxu3 %v734_v41 }
 0x17b   : > { %932 = vmatpush.msrb.mxu2 %v729_v22  ;;  %973 = vmatpush.msrb.mxu3 %v730_v42 }
 0x17d   : > { %933 = vmatpush.msrb.mxu2 %v725_v56  ;;  %974 = vmatpush.msrb.mxu3 %v726_v57 }
 0x17e   : > { %1185 = vmatmul.msk.f32.vlgmr.msrb.gmra.mxu2 %vm811_vm1, %v755_v25  ;;  %1193 = vmatmul.msk.f32.vlgmr.msrb.gmra.mxu3 %vm811_vm1, %v755_v25 }
 0x180   : > { %1170 = vmatmul.msk.f32.gmra.mxu0 %vm811_vm1, %v756_v17  ;;  %1178 = vmatmul.msk.f32.gmra.mxu1 %vm811_vm1, %v756_v17 }
 0x186   : > { %1186 = vmatmul.msk.f32.gmra.mxu2 %vm811_vm1, %v756_v17  ;;  %1194 = vmatmul.msk.f32.gmra.mxu3 %vm811_vm1, %v756_v17 }
 0x188   : > { %1171 = vmatmul.msk.f32.gmra.mxu0 %vm811_vm1, %v757_v18  ;;  %1179 = vmatmul.msk.f32.gmra.mxu1 %vm811_vm1, %v757_v18 }
 0x18e   : > { %1187 = vmatmul.msk.f32.gmra.mxu2 %vm811_vm1, %v757_v18  ;;  %1195 = vmatmul.msk.f32.gmra.mxu3 %vm811_vm1, %v757_v18 }
 0x190   : > { %1172 = vmatmul.msk.f32.gmra.mxu0 %vm811_vm1, %v758_v58  ;;  %1180 = vmatmul.msk.f32.gmra.mxu1 %vm811_vm1, %v758_v58 }
 0x196   : > { %1188 = vmatmul.msk.f32.gmra.mxu2 %vm811_vm1, %v758_v58  ;;  %1196 = vmatmul.msk.f32.gmra.mxu3 %vm811_vm1, %v758_v58  ;;  %v809_v58 = vpop.permute.xlu2 %808 }
 0x198   : > { %1173 = vmatmul.msk.f32.gmra.mxu0 %vm811_vm1, %v759_v59  ;;  %1181 = vmatmul.msk.f32.gmra.mxu1 %vm811_vm1, %v759_v59 }
 0x19e   : > { %1189 = vmatmul.msk.f32.gmra.mxu2 %vm811_vm1, %v759_v59  ;;  %1197 = vmatmul.msk.f32.gmra.mxu3 %vm811_vm1, %v759_v59 }
 0x1a0   : > { %1174 = vmatmul.msk.f32.gmra.mxu0 %vm811_vm1, %v760_v60  ;;  %1182 = vmatmul.msk.f32.gmra.mxu1 %vm811_vm1, %v760_v60 }
 0x1a6   : > { %1190 = vmatmul.msk.f32.gmra.mxu2 %vm811_vm1, %v760_v60  ;;  %1198 = vmatmul.msk.f32.gmra.mxu3 %vm811_vm1, %v760_v60 }
 0x1a8   : > { %1175 = vmatmul.msk.f32.gmra.mxu0 %vm811_vm1, %v761_v61  ;;  %1183 = vmatmul.msk.f32.gmra.mxu1 %vm811_vm1, %v761_v61 }
 0x1ae   : > { %1191 = vmatmul.msk.f32.gmra.mxu2 %vm811_vm1, %v761_v61  ;;  %1199 = vmatmul.msk.f32.gmra.mxu3 %vm811_vm1, %v761_v61 }
 0x1b0   : > { %1176 = vmatmul.msk.f32.gmra.mxu0 %vm811_vm1, %v762_v62  ;;  %1184 = vmatmul.msk.f32.gmra.mxu1 %vm811_vm1, %v762_v62 }
 0x1b6   : > { %1192 = vmatmul.msk.f32.gmra.mxu2 %vm811_vm1, %v762_v62  ;;  %1200 = vmatmul.msk.f32.gmra.mxu3 %vm811_vm1, %v762_v62 }
 0x1f5   : > { %v853_v0 = vpop.f32.mrf.mxu0  ;;  %v894_v1 = vpop.f32.mrf.mxu1 }
 0x1f6   : > { %v854_v2 = vadd.f32 %v853_v0, %v774_v63  ;;  %v895_v3 = vadd.f32 %v894_v1, %v774_v63 }
 0x1f8   : > { %1000 = vst [vmem:[%s1689_s30] sm:$0xff] %v854_v2 }
 0x1f9   : > { %1001 = vst [vmem:[%s1689_s30 + $0x8] sm:$0xff] %v895_v3 }
 0x1fd   : > { %v856_v5 = vpop.f32.mrf.mxu0  ;;  %v897_v6 = vpop.f32.mrf.mxu1 }
 0x1fe   : > { %v857_v7 = vadd.f32 %v856_v5, %v779_v4  ;;  %v898_v8 = vadd.f32 %v897_v6, %v779_v4 }
 0x200   : > { %1004 = vst [vmem:[%s1689_s30 + $0x20] sm:$0xff] %v857_v7 }
 0x201   : > { %1005 = vst [vmem:[%s1689_s30 + $0x28] sm:$0xff] %v898_v8  ;;  %v935_v9 = vpop.f32.mrf.mxu2  ;;  %v976_v10 = vpop.f32.mrf.mxu3 }
 0x202   : > { %v936_v11 = vadd.f32 %v935_v9, %v774_v63  ;;  %v977_v12 = vadd.f32 %v976_v10, %v774_v63 }
 0x204   : > { %1002 = vst [vmem:[%s1689_s30 + $0x10] sm:$0xff] %v936_v11 }
 0x205   : > { %1003 = vst [vmem:[%s1689_s30 + $0x18] sm:$0xff] %v977_v12  ;;  %v859_v14 = vpop.f32.mrf.mxu0  ;;  %v900_v28 = vpop.f32.mrf.mxu1 }
 0x206   : > { %v860_v29 = vadd.f32 %v859_v14, %v784_v13  ;;  %v901_v32 = vadd.f32 %v900_v28, %v784_v13 }
 0x208   : > { %1008 = vst [vmem:[%s1689_s30 + $0x40] sm:$0xff] %v860_v29 }
 0x209   : > { %1009 = vst [vmem:[%s1689_s30 + $0x48] sm:$0xff] %v901_v32  ;;  %v938_v33 = vpop.f32.mrf.mxu2  ;;  %v979_v36 = vpop.f32.mrf.mxu3 }
 0x20a   : > { %v939_v37 = vadd.f32 %v938_v33, %v779_v4  ;;  %v980_v43 = vadd.f32 %v979_v36, %v779_v4 }
 0x20c   : > { %1006 = vst [vmem:[%s1689_s30 + $0x30] sm:$0xff] %v939_v37 }
 0x20d   : > { %1007 = vst [vmem:[%s1689_s30 + $0x38] sm:$0xff] %v980_v43  ;;  %v862_v23 = vpop.f32.mrf.mxu0  ;;  %v903_v24 = vpop.f32.mrf.mxu1 }
 0x20e   : > { %v863_v47 = vadd.f32 %v862_v23, %v789_v38  ;;  %v904_v50 = vadd.f32 %v903_v24, %v789_v38 }
 0x210   : > { %1012 = vst [vmem:[%s1689_s30 + $0x60] sm:$0xff] %v863_v47 }
 0x211   : > { %1013 = vst [vmem:[%s1689_s30 + $0x68] sm:$0xff] %v904_v50  ;;  %v941_v48 = vpop.f32.mrf.mxu2  ;;  %v982_v49 = vpop.f32.mrf.mxu3 }
 0x212   : > { %v942_v51 = vadd.f32 %v941_v48, %v784_v13  ;;  %v983_v39 = vadd.f32 %v982_v49, %v784_v13 }
 0x214   : > { %1010 = vst [vmem:[%s1689_s30 + $0x50] sm:$0xff] %v942_v51 }
 0x215   : > { %1011 = vst [vmem:[%s1689_s30 + $0x58] sm:$0xff] %v983_v39  ;;  %v865_v20 = vpop.f32.mrf.mxu0  ;;  %v906_v40 = vpop.f32.mrf.mxu1 }
 0x216   : > { %v866_v52 = vadd.f32 %v865_v20, %v794_v19  ;;  %v907_v34 = vadd.f32 %v906_v40, %v794_v19 }
 0x218   : > { %1016 = vst [vmem:[%s1689_s30 + $0x80] sm:$0xff] %v866_v52 }
 0x219   : > { %1017 = vst [vmem:[%s1689_s30 + $0x88] sm:$0xff] %v907_v34  ;;  %v944_v35 = vpop.f32.mrf.mxu2  ;;  %v985_v15 = vpop.f32.mrf.mxu3 }
 0x21a   : > { %v945_v16 = vadd.f32 %v944_v35, %v789_v38  ;;  %v986_v44 = vadd.f32 %v985_v15, %v789_v38 }
 0x21c   : > { %1014 = vst [vmem:[%s1689_s30 + $0x70] sm:$0xff] %v945_v16 }
 0x21d   : > { %1015 = vst [vmem:[%s1689_s30 + $0x78] sm:$0xff] %v986_v44  ;;  %v868_v53 = vpop.f32.mrf.mxu0  ;;  %v909_v30 = vpop.f32.mrf.mxu1 }
 0x21e   : > { %v869_v31 = vadd.f32 %v868_v53, %v799_v45  ;;  %v910_v27 = vadd.f32 %v909_v30, %v799_v45 }
 0x220   : > { %1020 = vst [vmem:[%s1689_s30 + $0xa0] sm:$0xff] %v869_v31 }
 0x221   : > { %1021 = vst [vmem:[%s1689_s30 + $0xa8] sm:$0xff] %v910_v27  ;;  %v947_v46 = vpop.f32.mrf.mxu2  ;;  %v988_v54 = vpop.f32.mrf.mxu3 }
 0x222   : > { %v948_v25 = vadd.f32 %v947_v46, %v794_v19  ;;  %v989_v26 = vadd.f32 %v988_v54, %v794_v19 }
 0x224   : > { %1018 = vst [vmem:[%s1689_s30 + $0x90] sm:$0xff] %v948_v25 }
 0x225   : > { %1019 = vst [vmem:[%s1689_s30 + $0x98] sm:$0xff] %v989_v26  ;;  %v871_v21 = vpop.f32.mrf.mxu0  ;;  %v912_v41 = vpop.f32.mrf.mxu1 }
 0x226   : > { %v872_v22 = vadd.f32 %v871_v21, %v804_v55  ;;  %v913_v42 = vadd.f32 %v912_v41, %v804_v55 }
 0x228   : > { %1024 = vst [vmem:[%s1689_s30 + $0xc0] sm:$0xff] %v872_v22 }
 0x229   : > { %1025 = vst [vmem:[%s1689_s30 + $0xc8] sm:$0xff] %v913_v42  ;;  %v950_v56 = vpop.f32.mrf.mxu2  ;;  %v991_v57 = vpop.f32.mrf.mxu3 }
 0x22a   : > { %v951_v17 = vadd.f32 %v950_v56, %v799_v45  ;;  %v992_v18 = vadd.f32 %v991_v57, %v799_v45 }
 0x22c   : > { %1022 = vst [vmem:[%s1689_s30 + $0xb0] sm:$0xff] %v951_v17 }
 0x22d   : > { %1023 = vst [vmem:[%s1689_s30 + $0xb8] sm:$0xff] %v992_v18  ;;  %v874_v59 = vpop.f32.mrf.mxu0  ;;  %v915_v60 = vpop.f32.mrf.mxu1 }
 0x22e   : > { %v875_v61 = vadd.f32 %v874_v59, %v809_v58  ;;  %v916_v62 = vadd.f32 %v915_v60, %v809_v58 }
 0x230   : > { %1028 = vst [vmem:[%s1689_s30 + $0xe0] sm:$0xff] %v875_v61 }
 0x231   : > { %1029 = vst [vmem:[%s1689_s30 + $0xe8] sm:$0xff] %v916_v62  ;;  %v953_v63 = vpop.f32.mrf.mxu2  ;;  %v994_v0 = vpop.f32.mrf.mxu3 }
 0x232   : > { %v954_v1 = vadd.f32 %v953_v63, %v804_v55  ;;  %v995_v2 = vadd.f32 %v994_v0, %v804_v55 }
 0x234   : > { %1026 = vst [vmem:[%s1689_s30 + $0xd0] sm:$0xff] %v954_v1 }
 0x235   : > { %1027 = vst [vmem:[%s1689_s30 + $0xd8] sm:$0xff] %v995_v2 }
 0x239   : > { %v956_v3 = vpop.f32.mrf.mxu2  ;;  %v997_v4 = vpop.f32.mrf.mxu3 }
 0x23a   : > { %v957_v5 = vadd.f32 %v956_v3, %v809_v58  ;;  %v998_v6 = vadd.f32 %v997_v4, %v809_v58 }
 0x23c   : > { %1030 = vst [vmem:[%s1689_s30 + $0xf0] sm:$0xff] %v957_v5 }
 0x23d   : > { %1031 = vst [vmem:[%s1689_s30 + $0xf8] sm:$0xff] %v998_v6 }
 0x23e   : > { %1303 = shalt.err (!%p1300_p5)
}
 0x23f   : > { %s1358_s22 = smov 512   ;;  %s1359_s30 = smov 32  }
 0x240   : > { %1208 = dma.vmem_to_hbm [thread:$0]  (%p1440_p4), %s1048_s16, 4096, %s1050_s17, %s1033_s27, %s1358_s22, %s1358_s22, %s1359_s30  }
 0x241 PF: > { %p1214_p6 = scmp.ge.s32.totalorder %s1354_s29, 2  ;;  %s1064_s12 = sand.u32 1, %s1334_s24  }
 0x242   : > { %s1065_s15 = scalar_lea.sflag [#allocation3], %s1064_s12 }
 0x243   : > { %p1211_p7 = pnand %p1214_p6, %p1447_p8 }
 0x245   : > { %p1212_p9 = pneg %p1211_p7 }
 0x247   : > { %1329 = dma.done.wait (%p1212_p9), %s1065_s15, 4096  }
 0x248   : > { %1331 = vsyncadd (%p1212_p9), %s1065_s15, 4294963200  ;;  %s20_s29 = sadd.s32 1, %s1354_s29   ;;  %s1772_s24 = smov %s1338_s25 }
 0x249   : > { %p17_p10 = scmp.ge.s32.totalorder %s20_s29, 4   ;;  %s1773_s25 = smov %s1342_s26 }
 0x24a   : > { %s1774_s26 = smov %s1453_s14  ;;  %s1775_s27 = smov %s1350_s28 }
 0x24b   : > { %s1776_s28 = smov %s1778_s9  ;;  %19 = sbr.rel (!%p17_p10) target bundleno = 4 (0x4), region = 83 }
 0x250   :  { %1071 = vsyncpa [#allocation3], 1 }
 0x251   :  { %1073 = vsyncpa [#allocation3 + $0x1], 1 }

</bundles_post_ra>
